<compile_context>
chip_gen: v7x
topology: tpu7x:2x2x1
jax: 0.10.0
libtpu: 0.0.40
codegen_flags: <defaults>
</compile_context>

<pallas_src>
import functools

import jax
import jax.numpy as jnp
from jax.experimental import pallas as pl
from jax.experimental.pallas import tpu as pltpu


def _round_up(a, b):
    return ((a + b - 1) // b) * b


def _contrastive_tiles_kernel(xr_ref, xc_ref, lcol_ref, lrow_ref, out_ref,
                              pl_sc, pc_sc, nl_sc, nc_sc,
                              *, norm_s, margin, n_valid, tile):
    i = pl.program_id(0)
    j = pl.program_id(1)

    # --- init per-row-tile accumulators at the start of the j sweep ---------
    @pl.when(j == 0)
    def _():
        pl_sc[...] = jnp.zeros_like(pl_sc)
        pc_sc[...] = jnp.zeros_like(pc_sc)
        nl_sc[...] = jnp.zeros_like(nl_sc)
        nc_sc[...] = jnp.zeros_like(nc_sc)

    xi = xr_ref[...].astype(jnp.float32)            # (T, D) rows of this tile
    xj = xc_ref[...].astype(jnp.float32)            # (T, D) cols of this tile

    # f = norm_s * x / ||x||  via rsqrt (EUP); eps keeps zero pad rows finite.
    # TODO(synk): for bf16 inputs, cast fi/fj to bf16 before the dot for 2x MXU
    # throughput (keep the f32 accumulation via preferred_element_type).
    fi = xi * (norm_s * jax.lax.rsqrt(jnp.sum(xi * xi, axis=1, keepdims=True) + 1e-30))
    fj = xj * (norm_s * jax.lax.rsqrt(jnp.sum(xj * xj, axis=1, keepdims=True) + 1e-30))

    # Gram matrix on the MXU (contraction over D, i.e. fi @ fj.T without an
    # explicit transpose):  d_ij = ||f_i||^2 + ||f_j||^2 - 2 f_i.f_j = 2 s^2 - 2 g
    g = jax.lax.dot_general(fi, fj, (((1,), (1,)), ((), ())),
                            preferred_element_type=jnp.float32)       # (T, T)
    d = jnp.maximum(2.0 * norm_s * norm_s - 2.0 * g, 0.0)             # clamp rounding

    # --- masks --------------------------------------------------------------
    ri = i * tile + jax.lax.broadcasted_iota(jnp.int32, (tile, tile), 0)
    cj = j * tile + jax.lax.broadcasted_iota(jnp.int32, (tile, tile), 1)
    valid = (ri < n_valid) & (cj < n_valid)          # exclude padded rows/cols
    offdiag = ri != cj
    same = lcol_ref[...] == lrow_ref[...]            # (T,1) == (1,T) -> (T,T)

    base = valid & offdiag
    pos_m = (base & same).astype(jnp.float32)
    neg_m = (base & jnp.logical_not(same) & (d < margin)).astype(jnp.float32)

    # --- accumulate partial sums (stay in VMEM scratch, no per-tile HBM store)
    pl_sc[...] += jnp.sum(d * pos_m, keepdims=True)
    pc_sc[...] += jnp.sum(pos_m, keepdims=True)
    nl_sc[...] += jnp.sum(jnp.maximum(margin - d, 0.0) * neg_m, keepdims=True)
    nc_sc[...] += jnp.sum(neg_m, keepdims=True)

    # --- finalize: pack the 4 partials into one lane-dense (8,128) block -----
    @pl.when(j == pl.num_programs(1) - 1)
    def _():
        sub = jax.lax.broadcasted_iota(jnp.int32, (8, 128), 0)
        packed = (jnp.where(sub == 0, pl_sc[...], 0.0)
                  + jnp.where(sub == 1, pc_sc[...], 0.0)
                  + jnp.where(sub == 2, nl_sc[...], 0.0)
                  + jnp.where(sub == 3, nc_sc[...], 0.0))
        out_ref[...] = packed[None, :, :]


def my_contrastive_loss(x, labels, *, normalize_scale=3.0, margin=0.2):
    """Forward pass of MyContrastiveLoss: returns a scalar float32 loss."""
    n, d_feat = x.shape

    # Tile choice: 256 for large N (MXU friendly on v6e/v7x, multiple of 128 so
    # the label-row block stays lane-dense); a single 8-aligned padded tile for
    # small N.  On v5e a 128 tile would also be fine -- 256 still divides by 128.
    if n <= 256:
        tile = _round_up(max(n, 8), 8)
    else:
        tile = 256
    n_pad = _round_up(n, tile)
    num_t = n_pad // tile

    x_pad = jnp.zeros((n_pad, d_feat), x.dtype).at[:n, :].set(x)
    lab = jnp.full((n_pad,), -1, dtype=jnp.int32).at[:n].set(labels.astype(jnp.int32))
    lcol = lab.reshape(n_pad, 1)
    lrow = lab.reshape(1, n_pad)

    kernel = functools.partial(
        _contrastive_tiles_kernel,
        norm_s=float(normalize_scale),
        margin=float(margin),
        n_valid=n,
        tile=tile,
    )

    cost = pl.CostEstimate(
        flops=2 * n_pad * n_pad * d_feat + 12 * n_pad * n_pad,   # Gram + masking math
        transcendentals=2 * n_pad * num_t,                        # rsqrt per row per tile
        bytes_accessed=(2 * n_pad * num_t * d_feat * 4            # x row + col streams
                        + 2 * n_pad * num_t * 4                   # labels
                        + num_t * 8 * 128 * 4),                   # partial outputs
    )

    partials = pl.pallas_call(
        kernel,
        out_shape=jax.ShapeDtypeStruct((num_t, 8, 128), jnp.float32),
        grid_spec=pltpu.PrefetchScalarGridSpec(
            num_scalar_prefetch=0,
            grid=(num_t, num_t),
            in_specs=[
                pl.BlockSpec((tile, d_feat), lambda i, j: (i, 0)),   # x row block
                pl.BlockSpec((tile, d_feat), lambda i, j: (j, 0)),   # x col block
                pl.BlockSpec((tile, 1), lambda i, j: (i, 0)),        # labels (column)
                pl.BlockSpec((1, tile), lambda i, j: (0, j)),        # labels (lane row)
            ],
            out_specs=pl.BlockSpec((1, 8, 128), lambda i, j: (i, 0, 0)),
            scratch_shapes=[pltpu.VMEM((1, 1), jnp.float32)] * 4,
        ),
        compiler_params=pltpu.CompilerParams(
            dimension_semantics=("parallel", "arbitrary"),
            vmem_limit_bytes=64 * 1024 * 1024,
        ),
        cost_estimate=cost,
    )(x_pad, x_pad, lcol, lrow)

    pos_loss = jnp.sum(partials[:, 0, 0])
    pos_cnt = jnp.sum(partials[:, 1, 0])
    neg_loss = jnp.sum(partials[:, 2, 0])
    neg_cnt = jnp.sum(partials[:, 3, 0])
    return (pos_loss / (pos_cnt + 1e-10) + neg_loss / (neg_cnt + 1e-10)) * 0.5


def _reference(x, labels, normalize_scale=3.0, margin=0.2):
    """Pure-JAX reference matching the PyTorch forward semantics."""
    x = x.astype(jnp.float32)
    f = normalize_scale * x / jnp.linalg.norm(x, axis=1, keepdims=True)
    diff = f[:, None, :] - f[None, :, :]
    dist = jnp.sum(diff * diff, axis=-1)
    n = x.shape[0]
    offdiag = ~jnp.eye(n, dtype=bool)
    same = labels[:, None] == labels[None, :]
    pos_mask = (offdiag & same).astype(jnp.float32)
    neg_mask = (offdiag & ~same & (dist < margin)).astype(jnp.float32)
    pos_loss = jnp.sum(dist * pos_mask) / (jnp.sum(pos_mask) + 1e-10)
    neg_loss = (jnp.sum(jnp.maximum(margin - dist, 0.0) * neg_mask)
                / (jnp.sum(neg_mask) + 1e-10))
    return (pos_loss + neg_loss) / 2.0


if __name__ == "__main__":
    key = jax.random.PRNGKey(0)
    kx, kl = jax.random.split(key)
    N, D = 8, 32                                    # 8 samples, 32-dim features
    x = jax.random.normal(kx, (N, D), dtype=jnp.float32)
    labels = jax.random.randint(kl, (N,), 0, 3, dtype=jnp.int32)

    loss = my_contrastive_loss(x, labels)
    jax.block_until_ready(loss)

    ref = _reference(x, labels)
    assert jnp.allclose(loss, ref, atol=1e-3, rtol=1e-4), (float(loss), float(ref))
    print("KERNEL_OK")
</pallas_src>

<mosaic_0001>
module attributes {stable_mosaic.version = 11 : i64} {
  func.func @_contrastive_tiles_kernel(%arg0: i32, %arg1: i32, %arg2: memref<8x32xf32, #tpu.memory_space<vmem>>, %arg3: memref<8x32xf32, #tpu.memory_space<vmem>>, %arg4: memref<8x1xi32, #tpu.memory_space<vmem>>, %arg5: memref<1x8xi32, #tpu.memory_space<vmem>>, %arg6: memref<1x8x128xf32, #tpu.memory_space<vmem>>, %arg7: memref<1x1xf32, #tpu.memory_space<vmem>>, %arg8: memref<1x1xf32, #tpu.memory_space<vmem>>, %arg9: memref<1x1xf32, #tpu.memory_space<vmem>>, %arg10: memref<1x1xf32, #tpu.memory_space<vmem>>) attributes {dimension_semantics = [#tpu.dimension_semantics<parallel>, #tpu.dimension_semantics<arbitrary>], iteration_bounds = array<i64: 1, 1>, scalar_prefetch = 0 : i64, scratch_operands = 4 : i64, tpu.core_type = #tpu.core_type<tc>, window_params = [{transform_indices = @transform_0, window_bounds = array<i64: 8, 32>}, {transform_indices = @transform_1, window_bounds = array<i64: 8, 32>}, {transform_indices = @transform_2, window_bounds = array<i64: 8, 1>}, {transform_indices = @transform_3, window_bounds = array<i64: 1, 8>}, {transform_indices = @transform_4, window_bounds = array<i64: 1, 8, 128>}]} {
    %c0_i32 = arith.constant 0 : i32
    %0 = arith.cmpi eq, %arg1, %c0_i32 : i32
    %1 = arith.extui %0 : i1 to i32
    %c0_i32_0 = arith.constant 0 : i32
    %2 = arith.cmpi ne, %1, %c0_i32_0 : i32
    scf.if %2 {
      %cst_46 = arith.constant 0.000000e+00 : f32
      %103 = vector.broadcast %cst_46 : f32 to vector<1x1xf32>
      %c0_47 = arith.constant 0 : index
      %c0_48 = arith.constant 0 : index
      %104 = vector.load %arg7[%c0_47, %c0_48] : memref<1x1xf32, #tpu.memory_space<vmem>>, vector<1x1xf32>
      tpu.vector_store %arg7[%c0_47, %c0_48], %103 {strides = array<i32>} : memref<1x1xf32, #tpu.memory_space<vmem>>, vector<1x1xf32>,
      %cst_49 = arith.constant 0.000000e+00 : f32
      %105 = vector.broadcast %cst_49 : f32 to vector<1x1xf32>
      %c0_50 = arith.constant 0 : index
      %c0_51 = arith.constant 0 : index
      %106 = vector.load %arg8[%c0_50, %c0_51] : memref<1x1xf32, #tpu.memory_space<vmem>>, vector<1x1xf32>
      tpu.vector_store %arg8[%c0_50, %c0_51], %105 {strides = array<i32>} : memref<1x1xf32, #tpu.memory_space<vmem>>, vector<1x1xf32>,
      %cst_52 = arith.constant 0.000000e+00 : f32
      %107 = vector.broadcast %cst_52 : f32 to vector<1x1xf32>
      %c0_53 = arith.constant 0 : index
      %c0_54 = arith.constant 0 : index
      %108 = vector.load %arg9[%c0_53, %c0_54] : memref<1x1xf32, #tpu.memory_space<vmem>>, vector<1x1xf32>
      tpu.vector_store %arg9[%c0_53, %c0_54], %107 {strides = array<i32>} : memref<1x1xf32, #tpu.memory_space<vmem>>, vector<1x1xf32>,
      %cst_55 = arith.constant 0.000000e+00 : f32
      %109 = vector.broadcast %cst_55 : f32 to vector<1x1xf32>
      %c0_56 = arith.constant 0 : index
      %c0_57 = arith.constant 0 : index
      %110 = vector.load %arg10[%c0_56, %c0_57] : memref<1x1xf32, #tpu.memory_space<vmem>>, vector<1x1xf32>
      tpu.vector_store %arg10[%c0_56, %c0_57], %109 {strides = array<i32>} : memref<1x1xf32, #tpu.memory_space<vmem>>, vector<1x1xf32>,
    } else {
    }
    %c0 = arith.constant 0 : index
    %c0_1 = arith.constant 0 : index
    %3 = vector.load %arg2[%c0, %c0_1] : memref<8x32xf32, #tpu.memory_space<vmem>>, vector<8x32xf32>
    %c0_2 = arith.constant 0 : index
    %c0_3 = arith.constant 0 : index
    %4 = vector.load %arg3[%c0_2, %c0_3] : memref<8x32xf32, #tpu.memory_space<vmem>>, vector<8x32xf32>
    %5 = arith.mulf %3, %3 : vector<8x32xf32>
    %cst = arith.constant dense<0.000000e+00> : vector<8xf32>
    %6 = vector.multi_reduction <add>, %5, %cst [1] : vector<8x32xf32> to vector<8xf32>
    %7 = vector.shape_cast %6 : vector<8xf32> to vector<8x1xf32>
    %cst_4 = arith.constant 1.000000e-30 : f32
    %8 = vector.broadcast %cst_4 : f32 to vector<8x1xf32>
    %9 = arith.addf %7, %8 : vector<8x1xf32>
    %10 = math.rsqrt %9 : vector<8x1xf32>
    %cst_5 = arith.constant 3.000000e+00 : f32
    %11 = vector.broadcast %cst_5 : f32 to vector<8x1xf32>
    %12 = arith.mulf %11, %10 : vector<8x1xf32>
    %13 = vector.broadcast %12 : vector<8x1xf32> to vector<8x32xf32>
    %14 = arith.mulf %3, %13 : vector<8x32xf32>
    %15 = arith.mulf %4, %4 : vector<8x32xf32>
    %cst_6 = arith.constant dense<0.000000e+00> : vector<8xf32>
    %16 = vector.multi_reduction <add>, %15, %cst_6 [1] : vector<8x32xf32> to vector<8xf32>
    %17 = vector.shape_cast %16 : vector<8xf32> to vector<8x1xf32>
    %cst_7 = arith.constant 1.000000e-30 : f32
    %18 = vector.broadcast %cst_7 : f32 to vector<8x1xf32>
    %19 = arith.addf %17, %18 : vector<8x1xf32>
    %20 = math.rsqrt %19 : vector<8x1xf32>
    %cst_8 = arith.constant 3.000000e+00 : f32
    %21 = vector.broadcast %cst_8 : f32 to vector<8x1xf32>
    %22 = arith.mulf %21, %20 : vector<8x1xf32>
    %23 = vector.broadcast %22 : vector<8x1xf32> to vector<8x32xf32>
    %24 = arith.mulf %4, %23 : vector<8x32xf32>
    %cst_9 = arith.constant dense<0.000000e+00> : vector<8x8xf32>
    %25 = tpu.matmul %14, %24, %cst_9 {dimension_numbers = #tpu.dot_dimension_numbers<[1], [1], [0], [0], [0, 0, 1, 0], [], []>} : vector<8x32xf32>, vector<8x32xf32>, vector<8x8xf32> -> vector<8x8xf32>
    %cst_10 = arith.constant 2.000000e+00 : f32
    %26 = vector.broadcast %cst_10 : f32 to vector<8x8xf32>
    %27 = arith.mulf %26, %25 : vector<8x8xf32>
    %cst_11 = arith.constant 1.800000e+01 : f32
    %28 = vector.broadcast %cst_11 : f32 to vector<8x8xf32>
    %29 = arith.subf %28, %27 : vector<8x8xf32>
    %cst_12 = arith.constant 0.000000e+00 : f32
    %30 = vector.broadcast %cst_12 : f32 to vector<8x8xf32>
    %31 = arith.maximumf %29, %30 : vector<8x8xf32>
    %c8_i32 = arith.constant 8 : i32
    %32 = arith.muli %arg0, %c8_i32 : i32
    %33 = tpu.iota {dimensions = array<i32: 0>} : vector<8x8xi32>
    %34 = vector.broadcast %32 : i32 to vector<8x8xi32>
    %35 = arith.addi %34, %33 : vector<8x8xi32>
    %c8_i32_13 = arith.constant 8 : i32
    %36 = arith.muli %arg1, %c8_i32_13 : i32
    %37 = tpu.iota {dimensions = array<i32: 1>} : vector<8x8xi32>
    %38 = vector.broadcast %36 : i32 to vector<8x8xi32>
    %39 = arith.addi %38, %37 : vector<8x8xi32>
    %c8_i32_14 = arith.constant 8 : i32
    %40 = vector.broadcast %c8_i32_14 : i32 to vector<8x8xi32>
    %41 = arith.cmpi slt, %35, %40 : vector<8x8xi32>
    %c8_i32_15 = arith.constant 8 : i32
    %42 = vector.broadcast %c8_i32_15 : i32 to vector<8x8xi32>
    %43 = arith.cmpi slt, %39, %42 : vector<8x8xi32>
    %44 = arith.andi %41, %43 : vector<8x8xi1>
    %45 = arith.cmpi ne, %35, %39 : vector<8x8xi32>
    %c0_16 = arith.constant 0 : index
    %c0_17 = arith.constant 0 : index
    %46 = vector.load %arg4[%c0_16, %c0_17] : memref<8x1xi32, #tpu.memory_space<vmem>>, vector<8x1xi32>
    %c0_18 = arith.constant 0 : index
    %c0_19 = arith.constant 0 : index
    %47 = vector.load %arg5[%c0_18, %c0_19] : memref<1x8xi32, #tpu.memory_space<vmem>>, vector<1x8xi32>
    %48 = vector.broadcast %46 : vector<8x1xi32> to vector<8x8xi32>
    %49 = vector.broadcast %47 : vector<1x8xi32> to vector<8x8xi32>
    %50 = arith.cmpi eq, %48, %49 : vector<8x8xi32>
    %51 = arith.andi %44, %45 : vector<8x8xi1>
    %52 = arith.andi %51, %50 : vector<8x8xi1>
    %53 = arith.extui %52 : vector<8x8xi1> to vector<8x8xi32>
    %54 = arith.sitofp %53 : vector<8x8xi32> to vector<8x8xf32>
    %cst_20 = arith.constant dense<true> : vector<8x8xi1>
    %55 = arith.xori %50, %cst_20 : vector<8x8xi1>
    %56 = arith.andi %51, %55 : vector<8x8xi1>
    %cst_21 = arith.constant 2.000000e-01 : f32
    %57 = vector.broadcast %cst_21 : f32 to vector<8x8xf32>
    %58 = arith.cmpf olt, %31, %57 : vector<8x8xf32>
    %59 = arith.andi %56, %58 : vector<8x8xi1>
    %60 = arith.extui %59 : vector<8x8xi1> to vector<8x8xi32>
    %61 = arith.sitofp %60 : vector<8x8xi32> to vector<8x8xf32>
    %c0_22 = arith.constant 0 : index
    %c0_23 = arith.constant 0 : index
    %62 = vector.load %arg7[%c0_22, %c0_23] : memref<1x1xf32, #tpu.memory_space<vmem>>, vector<1x1xf32>
    %63 = arith.mulf %31, %54 : vector<8x8xf32>
    %64 = vector.shape_cast %63 : vector<8x8xf32> to vector<1x8x8xf32>
    %cst_24 = arith.constant dense<0.000000e+00> : vector<1xf32>
    %65 = vector.multi_reduction <add>, %64, %cst_24 [1, 2] : vector<1x8x8xf32> to vector<1xf32>
    %66 = vector.shape_cast %65 : vector<1xf32> to vector<1x1x1xf32>
    %67 = vector.extract %66[0, 0, 0] : f32 from vector<1x1x1xf32>
    %68 = vector.broadcast %67 : f32 to vector<1x1xf32>
    %69 = arith.addf %62, %68 : vector<1x1xf32>
    %c0_25 = arith.constant 0 : index
    %c0_26 = arith.constant 0 : index
    %70 = vector.load %arg7[%c0_25, %c0_26] : memref<1x1xf32, #tpu.memory_space<vmem>>, vector<1x1xf32>
    tpu.vector_store %arg7[%c0_25, %c0_26], %69 {strides = array<i32>} : memref<1x1xf32, #tpu.memory_space<vmem>>, vector<1x1xf32>,
    %c0_27 = arith.constant 0 : index
    %c0_28 = arith.constant 0 : index
    %71 = vector.load %arg8[%c0_27, %c0_28] : memref<1x1xf32, #tpu.memory_space<vmem>>, vector<1x1xf32>
    %72 = vector.shape_cast %54 : vector<8x8xf32> to vector<1x8x8xf32>
    %cst_29 = arith.constant dense<0.000000e+00> : vector<1xf32>
    %73 = vector.multi_reduction <add>, %72, %cst_29 [1, 2] : vector<1x8x8xf32> to vector<1xf32>
    %74 = vector.shape_cast %73 : vector<1xf32> to vector<1x1x1xf32>
    %75 = vector.extract %74[0, 0, 0] : f32 from vector<1x1x1xf32>
    %76 = vector.broadcast %75 : f32 to vector<1x1xf32>
    %77 = arith.addf %71, %76 : vector<1x1xf32>
    %c0_30 = arith.constant 0 : index
    %c0_31 = arith.constant 0 : index
    %78 = vector.load %arg8[%c0_30, %c0_31] : memref<1x1xf32, #tpu.memory_space<vmem>>, vector<1x1xf32>
    tpu.vector_store %arg8[%c0_30, %c0_31], %77 {strides = array<i32>} : memref<1x1xf32, #tpu.memory_space<vmem>>, vector<1x1xf32>,
    %c0_32 = arith.constant 0 : index
    %c0_33 = arith.constant 0 : index
    %79 = vector.load %arg9[%c0_32, %c0_33] : memref<1x1xf32, #tpu.memory_space<vmem>>, vector<1x1xf32>
    %cst_34 = arith.constant 2.000000e-01 : f32
    %80 = vector.broadcast %cst_34 : f32 to vector<8x8xf32>
    %81 = arith.subf %80, %31 : vector<8x8xf32>
    %cst_35 = arith.constant 0.000000e+00 : f32
    %82 = vector.broadcast %cst_35 : f32 to vector<8x8xf32>
    %83 = arith.maximumf %81, %82 : vector<8x8xf32>
    %84 = arith.mulf %83, %61 : vector<8x8xf32>
    %85 = vector.shape_cast %84 : vector<8x8xf32> to vector<1x8x8xf32>
    %cst_36 = arith.constant dense<0.000000e+00> : vector<1xf32>
    %86 = vector.multi_reduction <add>, %85, %cst_36 [1, 2] : vector<1x8x8xf32> to vector<1xf32>
    %87 = vector.shape_cast %86 : vector<1xf32> to vector<1x1x1xf32>
    %88 = vector.extract %87[0, 0, 0] : f32 from vector<1x1x1xf32>
    %89 = vector.broadcast %88 : f32 to vector<1x1xf32>
    %90 = arith.addf %79, %89 : vector<1x1xf32>
    %c0_37 = arith.constant 0 : index
    %c0_38 = arith.constant 0 : index
    %91 = vector.load %arg9[%c0_37, %c0_38] : memref<1x1xf32, #tpu.memory_space<vmem>>, vector<1x1xf32>
    tpu.vector_store %arg9[%c0_37, %c0_38], %90 {strides = array<i32>} : memref<1x1xf32, #tpu.memory_space<vmem>>, vector<1x1xf32>,
    %c0_39 = arith.constant 0 : index
    %c0_40 = arith.constant 0 : index
    %92 = vector.load %arg10[%c0_39, %c0_40] : memref<1x1xf32, #tpu.memory_space<vmem>>, vector<1x1xf32>
    %93 = vector.shape_cast %61 : vector<8x8xf32> to vector<1x8x8xf32>
    %cst_41 = arith.constant dense<0.000000e+00> : vector<1xf32>
    %94 = vector.multi_reduction <add>, %93, %cst_41 [1, 2] : vector<1x8x8xf32> to vector<1xf32>
    %95 = vector.shape_cast %94 : vector<1xf32> to vector<1x1x1xf32>
    %96 = vector.extract %95[0, 0, 0] : f32 from vector<1x1x1xf32>
    %97 = vector.broadcast %96 : f32 to vector<1x1xf32>
    %98 = arith.addf %92, %97 : vector<1x1xf32>
    %c0_42 = arith.constant 0 : index
    %c0_43 = arith.constant 0 : index
    %99 = vector.load %arg10[%c0_42, %c0_43] : memref<1x1xf32, #tpu.memory_space<vmem>>, vector<1x1xf32>
    tpu.vector_store %arg10[%c0_42, %c0_43], %98 {strides = array<i32>} : memref<1x1xf32, #tpu.memory_space<vmem>>, vector<1x1xf32>,
    %c0_i32_44 = arith.constant 0 : i32
    %100 = arith.cmpi eq, %arg1, %c0_i32_44 : i32
    %101 = arith.extui %100 : i1 to i32
    %c0_i32_45 = arith.constant 0 : i32
    %102 = arith.cmpi ne, %101, %c0_i32_45 : i32
    scf.if %102 {
      %103 = tpu.iota {dimensions = array<i32: 0>} : vector<8x128xi32>
      %c0_i32_46 = arith.constant 0 : i32
      %104 = vector.broadcast %c0_i32_46 : i32 to vector<8x128xi32>
      %105 = arith.cmpi eq, %103, %104 : vector<8x128xi32>
      %c0_47 = arith.constant 0 : index
      %c0_48 = arith.constant 0 : index
      %106 = vector.load %arg7[%c0_47, %c0_48] : memref<1x1xf32, #tpu.memory_space<vmem>>, vector<1x1xf32>
      %cst_49 = arith.constant 0.000000e+00 : f32
      %107 = vector.shape_cast %106 : vector<1x1xf32> to vector<1x1xf32>
      %108 = vector.broadcast %107 : vector<1x1xf32> to vector<8x128xf32>
      %109 = vector.broadcast %cst_49 : f32 to vector<8x128xf32>
      %110 = arith.select %105, %108, %109 : vector<8x128xi1>, vector<8x128xf32>
      %c1_i32 = arith.constant 1 : i32
      %111 = vector.broadcast %c1_i32 : i32 to vector<8x128xi32>
      %112 = arith.cmpi eq, %103, %111 : vector<8x128xi32>
      %c0_50 = arith.constant 0 : index
      %c0_51 = arith.constant 0 : index
      %113 = vector.load %arg8[%c0_50, %c0_51] : memref<1x1xf32, #tpu.memory_space<vmem>>, vector<1x1xf32>
      %cst_52 = arith.constant 0.000000e+00 : f32
      %114 = vector.shape_cast %113 : vector<1x1xf32> to vector<1x1xf32>
      %115 = vector.broadcast %114 : vector<1x1xf32> to vector<8x128xf32>
      %116 = vector.broadcast %cst_52 : f32 to vector<8x128xf32>
      %117 = arith.select %112, %115, %116 : vector<8x128xi1>, vector<8x128xf32>
      %118 = arith.addf %110, %117 : vector<8x128xf32>
      %c2_i32 = arith.constant 2 : i32
      %119 = vector.broadcast %c2_i32 : i32 to vector<8x128xi32>
      %120 = arith.cmpi eq, %103, %119 : vector<8x128xi32>
      %c0_53 = arith.constant 0 : index
      %c0_54 = arith.constant 0 : index
      %121 = vector.load %arg9[%c0_53, %c0_54] : memref<1x1xf32, #tpu.memory_space<vmem>>, vector<1x1xf32>
      %cst_55 = arith.constant 0.000000e+00 : f32
      %122 = vector.shape_cast %121 : vector<1x1xf32> to vector<1x1xf32>
      %123 = vector.broadcast %122 : vector<1x1xf32> to vector<8x128xf32>
      %124 = vector.broadcast %cst_55 : f32 to vector<8x128xf32>
      %125 = arith.select %120, %123, %124 : vector<8x128xi1>, vector<8x128xf32>
      %126 = arith.addf %118, %125 : vector<8x128xf32>
      %c3_i32 = arith.constant 3 : i32
      %127 = vector.broadcast %c3_i32 : i32 to vector<8x128xi32>
      %128 = arith.cmpi eq, %103, %127 : vector<8x128xi32>
      %c0_56 = arith.constant 0 : index
      %c0_57 = arith.constant 0 : index
      %129 = vector.load %arg10[%c0_56, %c0_57] : memref<1x1xf32, #tpu.memory_space<vmem>>, vector<1x1xf32>
      %cst_58 = arith.constant 0.000000e+00 : f32
      %130 = vector.shape_cast %129 : vector<1x1xf32> to vector<1x1xf32>
      %131 = vector.broadcast %130 : vector<1x1xf32> to vector<8x128xf32>
      %132 = vector.broadcast %cst_58 : f32 to vector<8x128xf32>
      %133 = arith.select %128, %131, %132 : vector<8x128xi1>, vector<8x128xf32>
      %134 = arith.addf %126, %133 : vector<8x128xf32>
      %135 = vector.shape_cast %134 : vector<8x128xf32> to vector<1x8x128xf32>
      %c0_59 = arith.constant 0 : index
      %c0_60 = arith.constant 0 : index
      %c0_61 = arith.constant 0 : index
      %136 = vector.load %arg6[%c0_59, %c0_60, %c0_61] : memref<1x8x128xf32, #tpu.memory_space<vmem>>, vector<1x8x128xf32>
      tpu.vector_store %arg6[%c0_59, %c0_60, %c0_61], %135 {strides = array<i32>} : memref<1x8x128xf32, #tpu.memory_space<vmem>>, vector<1x8x128xf32>,
    } else {
    }
    return
  }
  func.func @transform_0(%arg0: i32, %arg1: i32) -> (i32, i32) {
    %c0_i32 = arith.constant 0 : i32
    %c0_i32_0 = arith.constant 0 : i32
    return %arg0, %c0_i32 : i32, i32
  }
  func.func @transform_1(%arg0: i32, %arg1: i32) -> (i32, i32) {
    %c0_i32 = arith.constant 0 : i32
    %c0_i32_0 = arith.constant 0 : i32
    return %arg1, %c0_i32 : i32, i32
  }
  func.func @transform_2(%arg0: i32, %arg1: i32) -> (i32, i32) {
    %c0_i32 = arith.constant 0 : i32
    %c0_i32_0 = arith.constant 0 : i32
    return %arg0, %c0_i32 : i32, i32
  }
  func.func @transform_3(%arg0: i32, %arg1: i32) -> (i32, i32) {
    %c0_i32 = arith.constant 0 : i32
    %c0_i32_0 = arith.constant 0 : i32
    return %c0_i32, %arg1 : i32, i32
  }
  func.func @transform_4(%arg0: i32, %arg1: i32) -> (i32, i32, i32) {
    %c0_i32 = arith.constant 0 : i32
    %c0_i32_0 = arith.constant 0 : i32
    %c0_i32_1 = arith.constant 0 : i32
    return %arg0, %c0_i32, %c0_i32_0 : i32, i32, i32
  }
}

</mosaic_0001>

<bundles_post_ra>
// kernel: tpu_custom_call.1
= control target key start
LH: loop header
LB: loop body
LE: loop exit
PB: predicated region body
PF: predicated region fallthrough
CT: control target
= control target key end

     0   :  { %9 = vsyncpa [#allocation7], 0  ;;  %s628_s0 = inlined_call_operand.hbm [shape: f32[8,32], index: 0, kind: input, shape index: {}]   ;;  %s629_s1 = inlined_call_operand.hbm [shape: f32[8,32], index: 1, kind: input, shape index: {}]   ;;  %s630_s2 = inlined_call_operand.hbm [shape: s32[8,1], index: 2, kind: input, shape index: {}]   ;;  %s631_s3 = inlined_call_operand.hbm [shape: s32[1,8], index: 3, kind: input, shape index: {}]   ;;  %s632_s4 = inlined_call_operand.hbm [shape: f32[1,8,128], index: 4, kind: output, shape index: {}]  }
   0x1   :  { %10 = vsyncpa [#allocation10], 0 }
   0x2   :  { %11 = vsyncpa [#allocation13], 0 }
   0x3   :  { %12 = vsyncpa [#allocation8], 0  ;;  %s497_s15 = smov [#allocation9]   ;;  %s498_s17 = smov [#allocation6]  }
   0x4   :  { %s29_s16 = sshll.u32 %s497_s15, 4  ;;  %s19_s18 = sshll.u32 %s498_s17, 4  ;;  %s30_s16 = int_to_ptr.vmem [resolvable:$true] %s29_s16  ;;  %s20_s18 = int_to_ptr.vmem [resolvable:$true] %s19_s18 }
   0x5   :  { %s379_s21 = scalar_lea.hbm %s629_s1, 128 }
   0x6   :  { %p380_p0 = scmp.ne.s32.totalorder %s629_s1, %s379_s21  ;;  %p383_p1 = scmp.lt.u32.totalorder %s379_s21, %s629_s1 }
   0x8   :  { %p385_p2 = pnand %p383_p1, %p380_p0 }
   0xa   :  { %388 = shalt.err (!%p385_p2)
}
   0xb   :  { %s389_s26 = scalar_lea.vmem %s30_s16, 128  ;;  %p394_p4 = scmp.lt.s32.totalorder %s30_s16, %s30_s16 }
   0xc   :  { %p390_p3 = scmp.ne.s32.totalorder %s30_s16, %s389_s26  ;;  %p395_p5 = scmp.lt.s32.totalorder %s389_s26, %s389_s26 }
   0xe   :  { %p396_p6 = por %p395_p5, %p394_p4 }
  0x10   :  { %p397_p7 = pnand %p396_p6, %p390_p3 }
  0x12   :  { %400 = shalt.err (!%p397_p7)
}
  0x13   :  { %32 = dma.hbm_to_vmem [thread:$0]  %s629_s1, 128, %s30_s16, [#allocation10]  }
  0x14   :  { %s401_s5 = scalar_lea.hbm %s628_s0, 128 }
  0x15   :  { %p402_p8 = scmp.ne.s32.totalorder %s628_s0, %s401_s5  ;;  %p405_p9 = scmp.lt.u32.totalorder %s401_s5, %s628_s0 }
  0x17   :  { %p407_p10 = pnand %p405_p9, %p402_p8 }
  0x19   :  { %410 = shalt.err (!%p407_p10)
}
  0x1a   :  { %s411_s10 = scalar_lea.vmem %s20_s18, 128  ;;  %p416_p12 = scmp.lt.s32.totalorder %s20_s18, %s20_s18 }
  0x1b   :  { %p412_p11 = scmp.ne.s32.totalorder %s20_s18, %s411_s10  ;;  %p417_p13 = scmp.lt.s32.totalorder %s411_s10, %s411_s10 }
  0x1d   :  { %p418_p0 = por %p417_p13, %p416_p12 }
  0x1f   :  { %p419_p1 = pnand %p418_p0, %p412_p11 }
  0x21   :  { %422 = shalt.err (!%p419_p1)
}
  0x22   :  { %22 = dma.hbm_to_vmem [thread:$0]  %s628_s0, 128, %s20_s18, [#allocation7]  }
  0x23   :  { %s499_s12 = smov [#allocation11]   ;;  %s500_s14 = smov [#allocation12]  }
  0x24   :  { %s39_s13 = sshll.u32 %s499_s12, 4  ;;  %s49_s15 = sshll.u32 %s500_s14, 4  ;;  %s40_s13 = int_to_ptr.vmem [resolvable:$true] %s39_s13  ;;  %s50_s15 = int_to_ptr.vmem [resolvable:$true] %s49_s15 }
  0x25   :  { %s423_s19 = scalar_lea.hbm %s630_s2, 128 }
  0x26   :  { %p424_p2 = scmp.ne.s32.totalorder %s630_s2, %s423_s19  ;;  %p427_p3 = scmp.lt.u32.totalorder %s423_s19, %s630_s2 }
  0x28   :  { %p429_p4 = pnand %p427_p3, %p424_p2 }
  0x2a   :  { %432 = shalt.err (!%p429_p4)
}
  0x2b   :  { %s433_s0 = scalar_lea.vmem %s40_s13, 128  ;;  %p438_p6 = scmp.lt.s32.totalorder %s40_s13, %s40_s13 }
  0x2c   :  { %p434_p5 = scmp.ne.s32.totalorder %s40_s13, %s433_s0  ;;  %p439_p7 = scmp.lt.s32.totalorder %s433_s0, %s433_s0 }
  0x2e   :  { %p440_p8 = por %p439_p7, %p438_p6 }
  0x30   :  { %p441_p9 = pnand %p440_p8, %p434_p5 }
  0x32   :  { %444 = shalt.err (!%p441_p9)
}
  0x33   :  { %42 = dma.hbm_to_vmem [thread:$0]  %s630_s2, 128, %s40_s13, [#allocation10]  }
  0x34   :  { %s445_s27 = scalar_lea.hbm %s631_s3, 16 }
  0x35   :  { %p446_p10 = scmp.ne.s32.totalorder %s631_s3, %s445_s27  ;;  %p449_p11 = scmp.lt.u32.totalorder %s445_s27, %s631_s3 }
  0x37   :  { %p451_p12 = pnand %p449_p11, %p446_p10 }
  0x39   :  { %454 = shalt.err (!%p451_p12)
}
  0x3a   :  { %s455_s6 = scalar_lea.vmem %s50_s15, 16  ;;  %s459_s7 = scalar_lea.vmem %s50_s15, 32 }
  0x3b   :  { %p456_p13 = scmp.ne.s32.totalorder %s50_s15, %s455_s6  ;;  %p460_p0 = scmp.lt.s32.totalorder %s50_s15, %s50_s15 }
  0x3c   :  { %p461_p1 = scmp.lt.s32.totalorder %s459_s7, %s455_s6 }
  0x3e   :  { %p462_p2 = por %p461_p1, %p460_p0 }
  0x40   :  { %p463_p3 = pnand %p462_p2, %p456_p13 }
  0x42   :  { %466 = shalt.err (!%p463_p3)
}
  0x43   :  { %52 = dma.hbm_to_vmem [thread:$0]  %s631_s3, 16, %s50_s15, [#allocation13]  }
  0x44   :  { %489 = dma.done.wait [#allocation7], 128  }
  0x45   :  { %490 = vsyncadd [#allocation7], 4294967168 }
  0x46   :  { %491 = dma.done.wait [#allocation10], 256  }
  0x47   :  { %492 = vsyncadd [#allocation10], 4294967040 }
  0x48   :  { %493 = dma.done.wait [#allocation13], 16  }
  0x49   :  { %494 = vsyncadd [#allocation13], 4294967280  ;;  %v75_v0 = vld [vmem:[#allocation9] sm:$0xff]  ;;  %vm77_vm0 = vcmask 261120   ;;  %v74_v1 = vld [vmem:[#allocation6] sm:$0xff]  ;;  %v501_v6 = vmov 0.0   ;;  %v173_v15 = vlaneseq }
  0x4a   :  { %v85_v2 = vmul.f32 %v75_v0, %v75_v0  ;;  %v76_v3 = vmul.f32 %v74_v1, %v74_v1  ;;  %351 = vmatprep.subr.mxu0 %v501_v6  ;;  %vm502_vm1 = vmmov 0   ;;  %v186_v7 = vld [vmem:[#allocation11] sm:$0xff]  ;;  %v503_v8 = vmov 0   ;;  %v342_v22 = vld [vmem:[#allocation12] ss:$0 sm:$0xff]  ;;  %s505_s11 = smov [#allocation14]  }
  0x4b   :  { %353 = vmatprep.mubr.msk.f32.mxu0 %vm502_vm1, %v501_v6  ;;  %373 = vset.pattern.permute.xlu1 %v503_v8  ;;  %v582_v19 = vshrl.u32 %v173_v15, 7  ;;  %v179_v20 = vand.u32 127, %v173_v15  ;;  %vm504_vm6 = vmmov 1   ;;  %vm208_vm10 = vcmask 64512   ;;  %s329_s12 = sshll.u32 %s505_s11, 4  ;;  %s330_s12 = int_to_ptr.vmem [resolvable:$true] %s329_s12 }
  0x4c   :  { %v86_v4 = vsel %vm77_vm0, %v85_v2, 0.0  ;;  %v78_v5 = vsel %vm77_vm0, %v76_v3, 0.0  ;;  %374 = vset.pattern.permute.xlu0 %v503_v8  ;;  %189 = vperm.xlu1 %373, %v186_v7   ;;  %vm69_vm13 = vcmask 0   ;;  %s467_s13 = scalar_lea.vmem %s330_s12, 128  ;;  %p472_p5 = scmp.lt.s32.totalorder %s330_s12, %s330_s12 }
  0x4d   :  { %87 = vadd.xlane.f32.xlu0 %v86_v4  ;;  %vm183_vm2 = vcmp.lt.s32.totalorder %v179_v20, 8  ;;  %vm185_vm3 = vcmp.ne.s32.totalorder %v582_v19, %v179_v20  ;;  %70 = vst.msk [vmem:[#allocation2] sm:$0x1] %vm69_vm13, %v501_v6  ;;  %71 = vst.msk [vmem:[#allocation3] sm:$0x1] %vm69_vm13, %v501_v6  ;;  %vm283_vm14 = vcmp.eq.s32.totalorder %v582_v19, 1  ;;  %p468_p4 = scmp.ne.s32.totalorder %s330_s12, %s467_s13  ;;  %p473_p6 = scmp.lt.s32.totalorder %s467_s13, %s467_s13 }
  0x4e   :  { %vm586_vm4 = vmand %vm183_vm2, %vm185_vm3  ;;  %72 = vst.msk [vmem:[#allocation4] sm:$0x1] %vm69_vm13, %v501_v6  ;;  %vm271_vm15 = vcmp.eq.s32.totalorder %v582_v19, 0  ;;  %vm309_vm1 = vcmp.eq.s32.totalorder %v582_v19, 3 }
  0x4f   :  { %73 = vst.msk [vmem:[#allocation5] sm:$0x1] %vm69_vm13, %v501_v6  ;;  %p474_p7 = por %p473_p6, %p472_p5 }
  0x51   :  { %79 = vadd.xlane.f32.xlu0 %v78_v5  ;;  %p475_p8 = pnand %p474_p7, %p468_p4 }
  0x54   :  { %v206_v5 = vld [vmem:[#allocation2] sm:$0x1] }
  0xcb   :  { %v190_v23 = vpop.permute.xlu1 %189 }
  0xcc   :  { %vm195_vm5 = vcmp.eq.s32.totalorder %v190_v23, %v342_v22 }
  0xcd   :  { %vm590_vm7 = vmxor %vm195_vm5, %vm504_vm6 }
  0xce   :  { %vm201_vm8 = vmand %vm586_vm4, %vm590_vm7 }
  0xcf   :  { %vm197_vm9 = vmand %vm586_vm4, %vm195_vm5 }
  0xd0   :  { %v343_v26 = vsel %vm197_vm9, 1.0, %v501_v6 }
  0xd1   :  { %v224_v27 = vsel %vm208_vm10, %v343_v26, 0.0 }
  0xd2   :  { %225 = vadd.xlane.f32.xlu0 %v224_v27 }
  0xda   :  { %v88_v9 = vpop.xlane.xlu0 %87 }
  0xdb   :  { %v89_v10 = vadd.f32 1e-30, %v88_v9 }
  0xdd   :  { %375 = vrsqrt.f32 %v89_v10 }
  0xde   :  { %v80_v11 = vpop.xlane.xlu0 %79 }
  0xdf   :  { %v81_v12 = vadd.f32 1e-30, %v80_v11  ;;  %v237_v11 = vld [vmem:[#allocation4] sm:$0x1] }
  0xe1   :  { %377 = vrsqrt.f32 %v81_v12 }
  0xe7   :  { %v376_v13 = vpop.eup %375 }
  0xe8   :  { %v91_v14 = vmul.f32 3.0, %v376_v13 }
  0xea   :  { %v92_v16 = vmul.f32 %v91_v14, %v75_v0  ;;  %v254_v14 = vld [vmem:[#allocation5] sm:$0x1] }
  0xeb   :  { %v378_v17 = vpop.eup %377 }
  0xec   :  { %v83_v18 = vmul.f32 3.0, %v378_v17  ;;  %352 = vmatpush3.xpose.msk.msra.mxu0 %vm77_vm0, %v92_v16 }
  0xee   :  { %v84_v21 = vmul.f32 %v83_v18, %v74_v1 }
  0xf0   :  { %354 = vmatmul.mubr.msk.f32.vlgmr.msra.gmra.mrb[0].mxu0 %vm77_vm0, %v84_v21  ;;  %vm296_vm0 = vcmp.eq.s32.totalorder %v582_v19, 2 }
 0x15f   :  { %v226_v41 = vpop.xlane.xlu0 %225 }
 0x160   :  { %v227_v42 = vrot.slane %v226_v41, 4 }
 0x162   :  { %v228_v43 = vadd.f32 %v227_v42, %v226_v41 }
 0x164   :  { %v229_v44 = vrot.slane %v228_v43, 2 }
 0x166   :  { %v230_v49 = vadd.f32 %v229_v44, %v228_v43 }
 0x168   :  { %v231_v55 = vrot.slane %v230_v49, 1 }
 0x16a   :  { %v232_v62 = vadd.f32 %v231_v55, %v230_v49 }
 0x1c3   :  { %v165_v28 = vpop.f32.mrb[0].mxu0 }
 0x1c4   :  { %v169_v29 = vmul.f32 2.0, %v165_v28  ;;  %v355_v30 = vpop.f32.mrb[1].mxu0 }
 0x1c6   :  { %v170_v31 = vsub.f32 18.0, %v169_v29 }
 0x1c8   :  { %v171_v32 = vmax.f32 %v170_v31, 0.0 }
 0x1ca   :  { %v207_v33 = vmul.f32 %v343_v26, %v171_v32  ;;  %vm202_vm11 = vcmp.lt.f32.partialorder %v171_v32, 0.2  ;;  %v238_v34 = vsub.f32 0.2, %v171_v32 }
 0x1cb   :  { %vm203_vm12 = vmand %vm201_vm8, %vm202_vm11 }
 0x1cc   :  { %v209_v35 = vsel %vm208_vm10, %v207_v33, 0.0  ;;  %v344_v36 = vsel %vm203_vm12, 1.0, %v501_v6  ;;  %v239_v37 = vmax.f32 %v238_v34, 0.0  ;;  %v223_v6 = vld [vmem:[#allocation3] sm:$0x1] }
 0x1cd   :  { %210 = vadd.xlane.f32.xlu1 %v209_v35  ;;  %v255_v40 = vsel %vm208_vm10, %v344_v36, 0.0 }
 0x1ce   :  { %v240_v38 = vmul.f32 %v344_v36, %v239_v37 }
 0x1d0   :  { %v241_v39 = vsel %vm208_vm10, %v240_v38, 0.0 }
 0x1d1   :  { %242 = vadd.xlane.f32.xlu0 %v241_v39 }
 0x1d5   :  { %256 = vadd.xlane.f32.xlu0 %v255_v40 }
 0x25a   :  { %v211_v45 = vpop.xlane.xlu1 %210 }
 0x25b   :  { %v212_v46 = vrot.slane %v211_v45, 4 }
 0x25d   :  { %v213_v47 = vadd.f32 %v212_v46, %v211_v45 }
 0x25e   :  { %v243_v48 = vpop.xlane.xlu0 %242 }
 0x25f   :  { %v214_v50 = vrot.slane %v213_v47, 2  ;;  %v244_v51 = vrot.slane %v243_v48, 4 }
 0x261   :  { %v245_v52 = vadd.f32 %v244_v51, %v243_v48  ;;  %v215_v53 = vadd.f32 %v214_v50, %v213_v47 }
 0x262   :  { %v257_v54 = vpop.xlane.xlu0 %256 }
 0x263   :  { %v246_v56 = vrot.slane %v245_v52, 2  ;;  %v258_v57 = vrot.slane %v257_v54, 4  ;;  %v216_v58 = vrot.slane %v215_v53, 1 }
 0x265   :  { %v259_v59 = vadd.f32 %v258_v57, %v257_v54  ;;  %v217_v60 = vadd.f32 %v216_v58, %v215_v53  ;;  %v247_v61 = vadd.f32 %v246_v56, %v245_v52 }
 0x267   :  { %v260_v63 = vrot.slane %v259_v59, 2  ;;  %356 = vpush %v217_v60  ;;  %v248_v0 = vrot.slane %v247_v61, 1 }
 0x268   :  { %358 = vpush %v232_v62 }
 0x269   :  { %v249_v1 = vadd.f32 %v248_v0, %v247_v61  ;;  %v261_v2 = vadd.f32 %v260_v63, %v259_v59 }
 0x26b   :  { %360 = vpush %v249_v1  ;;  %v262_v3 = vrot.slane %v261_v2, 1 }
 0x26d   :  { %v263_v4 = vadd.f32 %v262_v3, %v261_v2 }
 0x26f   :  { %362 = vpush %v263_v4 }
 0x298   :  { %s357_s3 = spop %356 }
 0x299   :  { %v219_v7 = vstv %s357_s3  ;;  %s359_s9 = spop %358 }
 0x29a   :  { %v220_v8 = vadd.f32 %v219_v7, %v206_v5  ;;  %v234_v9 = vstv %s359_s9 }
 0x29b   :  { %v235_v10 = vadd.f32 %v234_v9, %v223_v6 }
 0x29c   :  { %222 = vst.msk [vmem:[#allocation2] sm:$0x1] %vm69_vm13, %v220_v8  ;;  %s361_s10 = spop %360 }
 0x29d   :  { %236 = vst.msk [vmem:[#allocation3] sm:$0x1] %vm69_vm13, %v235_v10  ;;  %v251_v12 = vstv %s361_s10 }
 0x29e   :  { %v252_v13 = vadd.f32 %v251_v12, %v237_v11 }
 0x2a0   :  { %253 = vst.msk [vmem:[#allocation4] sm:$0x1] %vm69_vm13, %v252_v13  ;;  %s363_s1 = spop %362 }
 0x2a1   :  { %v265_v15 = vstv %s363_s1 }
 0x2a2   :  { %v266_v16 = vadd.f32 %v265_v15, %v254_v14 }
 0x2a3   :  { %v345_v17 = vld [vmem:[#allocation2] ss:$0 sm:$0xff] }
 0x2a4   :  { %267 = vst.msk [vmem:[#allocation5] sm:$0x1] %vm69_vm13, %v266_v16  ;;  %v346_v18 = vld [vmem:[#allocation3] ss:$0 sm:$0xff]  ;;  %279 = vperm.xlu0 %374, %v345_v17  }
 0x2a5   :  { %291 = vperm.xlu1 %373, %v346_v18  }
 0x2a7   :  { %v347_v20 = vld [vmem:[#allocation4] ss:$0 sm:$0xff] }
 0x2a9   :  { %304 = vperm.xlu1 %373, %v347_v20  }
 0x2ab   :  { %v348_v21 = vld [vmem:[#allocation5] ss:$0 sm:$0xff] }
 0x2ad   :  { %317 = vperm.xlu1 %373, %v348_v21  }
 0x323   :  { %v280_v23 = vpop.permute.xlu0 %279 }
 0x324   :  { %v292_v22 = vpop.permute.xlu1 %291  ;;  %v282_v25 = vsel %vm271_vm15, %v280_v23, 0.0 }
 0x325   :  { %v294_v24 = vsel %vm283_vm14, %v292_v22, 0.0 }
 0x326   :  { %v295_v28 = vadd.f32 %v294_v24, %v282_v25 }
 0x328   :  { %v305_v26 = vpop.permute.xlu1 %304 }
 0x329   :  { %v307_v27 = vsel %vm296_vm0, %v305_v26, 0.0 }
 0x32a   :  { %v308_v29 = vadd.f32 %v307_v27, %v295_v28 }
 0x32c   :  { %v318_v30 = vpop.permute.xlu1 %317 }
 0x32d   :  { %v320_v31 = vsel %vm309_vm1, %v318_v30, 0.0 }
 0x32e   :  { %v321_v32 = vadd.f32 %v320_v31, %v308_v29 }
 0x330   :  { %322 = vst [vmem:[#allocation14] sm:$0xff] %v321_v32 }
 0x331   :  { %478 = shalt.err (!%p475_p8)
}
 0x332   :  { %s479_s16 = scalar_lea.hbm %s632_s4, 128 }
 0x333   :  { %p480_p9 = scmp.ne.s32.totalorder %s632_s4, %s479_s16  ;;  %p483_p10 = scmp.lt.u32.totalorder %s479_s16, %s632_s4 }
 0x335   :  { %p485_p11 = pnand %p483_p10, %p480_p9 }
 0x337   :  { %488 = shalt.err (!%p485_p11)
}
 0x338   :  { %332 = dma.vmem_to_hbm [thread:$0]  %s330_s12, 128, %s632_s4, [#allocation8]  }
 0x339   :  { %495 = dma.done.wait [#allocation8], 128  }
 0x33a   :  { %496 = vsyncadd [#allocation8], 4294967168 }
 0x33b   :  { %336 = vsyncpa [#allocation7], 1 }
 0x33c   :  { %337 = vsyncpa [#allocation10], 1 }
 0x33d   :  { %338 = vsyncpa [#allocation13], 1 }
 0x33e   :  { %339 = vsyncpa [#allocation8], 1 }

</bundles_post_ra>
